<compile_context>
chip_gen: v7x
topology: tpu7x:2x2x1
jax: 0.10.0
libtpu: 0.0.40
codegen_flags: <defaults>
</compile_context>

<pallas_src>
import jax
import jax.numpy as jnp
from jax.experimental import pallas as pl
from jax.experimental.pallas import tpu as pltpu

IN_FEATURES = 10
OUT_FEATURES = 1


def linear_kernel(xT_ref, w_ref, b_ref, o_ref):
    # xT_ref: (IN, TB)  native dtype; features on sublanes, batch on lanes
    # w_ref:  (IN, 1)   f32 weight column
    # b_ref:  (1,)      f32 bias scalar in SMEM
    # o_ref:  (1, TB)   lane-dense output tile in the caller's dtype
    xt = xT_ref[...].astype(jnp.float32)
    w = w_ref[...].astype(jnp.float32)
    # VPU multiply (broadcast over lanes) + cheap sublane reduction over the
    # 10 feature rows; no MXU involvement.
    y = jnp.sum(xt * w, axis=0, keepdims=True)          # (1, TB) float32
    o_ref[...] = (y + b_ref[0]).astype(o_ref.dtype)


def simple_model_forward(x, weight, bias, *, max_tile=65536):
    """Pallas equivalent of SimpleModel.forward (nn.Linear(10, 1)).

    x:      (batch, IN_FEATURES)
    weight: (OUT_FEATURES, IN_FEATURES)   (PyTorch convention)
    bias:   (OUT_FEATURES,)
    returns (batch, OUT_FEATURES) in x.dtype
    """
    batch = x.shape[0]
    out_dtype = x.dtype

    # Layout plumbing only: batch on the lane axis; keep x's native dtype.
    # TODO(synk): if the upstream producer can emit x already as (IN, batch),
    # this transpose (one extra HBM pass over x) disappears entirely.
    xT = x.T                                                               # (IN, batch)
    w_col = weight.reshape(OUT_FEATURES, IN_FEATURES).T.astype(jnp.float32)  # (IN, 1)
    b = bias.reshape(OUT_FEATURES).astype(jnp.float32)                     # (1,)

    if batch <= max_tile:
        # Single block == full array dims: any batch size is legal.
        tb = batch
    else:
        # Multi-tile: lane-axis block width must be a multiple of 128.
        tb = max(128, (max_tile // 128) * 128)

    grid = (pl.cdiv(batch, tb),)

    x_bytes = jnp.dtype(x.dtype).itemsize
    o_bytes = jnp.dtype(out_dtype).itemsize
    cost = pl.CostEstimate(
        flops=2 * IN_FEATURES * batch,
        transcendentals=0,
        bytes_accessed=IN_FEATURES * batch * x_bytes
        + OUT_FEATURES * batch * o_bytes
        + IN_FEATURES * OUT_FEATURES * 4
        + OUT_FEATURES * 4,
    )

    out = pl.pallas_call(
        linear_kernel,
        out_shape=jax.ShapeDtypeStruct((OUT_FEATURES, batch), out_dtype),
        grid=grid,
        in_specs=[
            pl.BlockSpec((IN_FEATURES, tb), lambda i: (0, i)),
            pl.BlockSpec((IN_FEATURES, OUT_FEATURES), lambda i: (0, 0)),
            pl.BlockSpec(memory_space=pltpu.MemorySpace.SMEM),
        ],
        out_specs=pl.BlockSpec((OUT_FEATURES, tb), lambda i: (0, i)),
        compiler_params=pltpu.CompilerParams(
            dimension_semantics=("parallel",),   # shards batch tiles across TCs on v7x
        ),
        cost_estimate=cost,
    )(xT, w_col, b)

    # (1, batch) -> (batch, 1): row-major reshape, effectively free.
    return out.reshape(batch, OUT_FEATURES)


if __name__ == "__main__":
    key = jax.random.PRNGKey(0)
    kx, kw, kb = jax.random.split(key, 3)

    batch = 8
    # Deterministic parameter init mimicking PyTorch's nn.Linear default
    # (uniform in [-1/sqrt(in_features), 1/sqrt(in_features)]).
    bound = 1.0 / jnp.sqrt(jnp.float32(IN_FEATURES))
    weight = jax.random.uniform(
        kw, (OUT_FEATURES, IN_FEATURES), jnp.float32, -bound, bound
    )
    bias = jax.random.uniform(kb, (OUT_FEATURES,), jnp.float32, -bound, bound)

    x = jax.random.normal(kx, (batch, IN_FEATURES), jnp.float32)

    out = simple_model_forward(x, weight, bias)
    out = jax.block_until_ready(out)

    # Correctness check vs plain-JAX reference of the PyTorch forward.
    ref = x @ weight.T + bias
    assert out.shape == (batch, OUT_FEATURES)
    assert out.dtype == x.dtype
    assert jnp.allclose(out, ref, atol=1e-5, rtol=1e-5)

    print("KERNEL_OK")
</pallas_src>

<mosaic_0001>
module attributes {stable_mosaic.version = 11 : i64} {
  func.func @linear_kernel(%arg0: i32, %arg1: memref<10x8xf32, #tpu.memory_space<vmem>>, %arg2: memref<10x1xf32, #tpu.memory_space<vmem>>, %arg3: memref<1xf32, #tpu.memory_space<smem>>, %arg4: memref<1x8xf32, #tpu.memory_space<vmem>>) attributes {dimension_semantics = [#tpu.dimension_semantics<parallel>], iteration_bounds = array<i64: 1>, scalar_prefetch = 0 : i64, scratch_operands = 0 : i64, tpu.core_type = #tpu.core_type<tc>, window_params = [{transform_indices = @transform_0, window_bounds = array<i64: 10, 8>}, {pipeline_mode = #tpu.pipeline_mode<synchronous>, transform_indices = @transform_1, window_bounds = array<i64: 10, 1>}, {transform_indices = @transform_2, window_bounds = array<i64: 1>}, {transform_indices = @transform_3, window_bounds = array<i64: 1, 8>}]} {
    %c0 = arith.constant 0 : index
    %c0_0 = arith.constant 0 : index
    %0 = vector.load %arg1[%c0, %c0_0] : memref<10x8xf32, #tpu.memory_space<vmem>>, vector<10x8xf32>
    %c0_1 = arith.constant 0 : index
    %c0_2 = arith.constant 0 : index
    %1 = vector.load %arg2[%c0_1, %c0_2] : memref<10x1xf32, #tpu.memory_space<vmem>>, vector<10x1xf32>
    %2 = vector.broadcast %1 : vector<10x1xf32> to vector<10x8xf32>
    %3 = arith.mulf %0, %2 : vector<10x8xf32>
    %cst = arith.constant dense<0.000000e+00> : vector<8xf32>
    %4 = vector.multi_reduction <add>, %3, %cst [0] : vector<10x8xf32> to vector<8xf32>
    %5 = vector.shape_cast %4 : vector<8xf32> to vector<1x8xf32>
    %c0_3 = arith.constant 0 : index
    %6 = memref.load %arg3[%c0_3] : memref<1xf32, #tpu.memory_space<smem>>
    %7 = vector.broadcast %6 : f32 to vector<1x8xf32>
    %8 = arith.addf %5, %7 : vector<1x8xf32>
    %c0_4 = arith.constant 0 : index
    %c0_5 = arith.constant 0 : index
    %9 = vector.load %arg4[%c0_4, %c0_5] : memref<1x8xf32, #tpu.memory_space<vmem>>, vector<1x8xf32>
    tpu.vector_store %arg4[%c0_4, %c0_5], %8 {strides = array<i32>} : memref<1x8xf32, #tpu.memory_space<vmem>>, vector<1x8xf32>,
    return
  }
  func.func @transform_0(%arg0: i32) -> (i32, i32) {
    %c0_i32 = arith.constant 0 : i32
    %c0_i32_0 = arith.constant 0 : i32
    return %c0_i32, %arg0 : i32, i32
  }
  func.func @transform_1(%arg0: i32) -> (i32, i32) {
    %c0_i32 = arith.constant 0 : i32
    %c0_i32_0 = arith.constant 0 : i32
    %c0_i32_1 = arith.constant 0 : i32
    return %c0_i32, %c0_i32_0 : i32, i32
  }
  func.func @transform_2(%arg0: i32) -> i32 {
    %c0_i32 = arith.constant 0 : i32
    %c0_i32_0 = arith.constant 0 : i32
    return %c0_i32 : i32
  }
  func.func @transform_3(%arg0: i32) -> (i32, i32) {
    %c0_i32 = arith.constant 0 : i32
    %c0_i32_0 = arith.constant 0 : i32
    return %c0_i32, %arg0 : i32, i32
  }
}

</mosaic_0001>

<bundles_post_ra>
// kernel: tpu_custom_call.1
= control target key start
LH: loop header
LB: loop body
LE: loop exit
PB: predicated region body
PF: predicated region fallthrough
CT: control target
= control target key end

     0   :  { %v89_v1 = vmov 0   ;;  %s138_s0 = inlined_call_operand.vmem [shape: f32[10,8], index: 0, kind: input, shape index: {}]   ;;  %s139_s1 = inlined_call_operand.vmem [shape: f32[10,1], index: 1, kind: input, shape index: {}]   ;;  %s140_s2 = inlined_call_operand.<no memory space> [shape: f32[1], index: 2, kind: input, shape index: {}]   ;;  %s141_s3 = inlined_call_operand.hbm [shape: f32[1,8], index: 3, kind: output, shape index: {}]  }
   0x1   :  { %v18_v0 = vld [vmem:[%s139_s1] sm:$0xff]  ;;  %64 = vset.pattern.permute.xlu0 %v89_v1 }
   0x2   :  { %9 = vsyncpa [#allocation4], 0  ;;  %22 = vperm.xlu0 %64, %v18_v0   ;;  %v19_v2 = vld [vmem:[%s139_s1 + $0x8] sm:$0x3]  ;;  %v16_v4 = vld [vmem:[%s138_s0] sm:$0xff]  ;;  %vm32_vm0 = vcmask 64512   ;;  %v44_v17 = vstv %s140_s2 }
   0x3   :  { %v17_v5 = vld [vmem:[%s138_s0 + $0x8] sm:$0x3]  ;;  %vm34_vm1 = vcmask 58368   ;;  %s90_s21 = smov [#allocation3]   ;;  %vm46_vm2 = vcmask 57344  }
   0x4   :  { %s54_s22 = sshll.u32 %s90_s21, 4  ;;  %s55_s22 = int_to_ptr.vmem [resolvable:$true] %s54_s22 }
   0x5   :  { %s65_s0 = scalar_lea.vmem %s55_s22, 16  ;;  %s69_s23 = scalar_lea.vmem %s55_s22, 32 }
   0x6   :  { %27 = vperm.xlu0 %64, %v19_v2   ;;  %p66_p0 = scmp.ne.s32.totalorder %s55_s22, %s65_s0  ;;  %p70_p1 = scmp.lt.s32.totalorder %s55_s22, %s55_s22 }
   0x7   :  { %p71_p2 = scmp.lt.s32.totalorder %s69_s23, %s65_s0 }
   0x9   :  { %p72_p3 = por %p71_p2, %p70_p1 }
   0xb   :  { %p73_p4 = pnand %p72_p3, %p66_p0 }
  0x81   :  { %v23_v3 = vpop.permute.xlu0 %22 }
  0x82   :  { %v30_v6 = vmul.f32 %v23_v3, %v16_v4 }
  0x84   :  { %v33_v9 = vsel %vm32_vm0, %v30_v6, 0.0 }
  0x85   :  { %v28_v7 = vpop.permute.xlu0 %27 }
  0x86   :  { %v31_v8 = vmul.f32 %v28_v7, %v17_v5 }
  0x88   :  { %v35_v10 = vsel %vm34_vm1, %v31_v8, 0.0 }
  0x89   :  { %v36_v11 = vadd.f32 %v35_v10, %v33_v9 }
  0x8b   :  { %v37_v12 = vrot.slane %v36_v11, 4 }
  0x8d   :  { %v38_v13 = vadd.f32 %v37_v12, %v36_v11 }
  0x8f   :  { %v39_v14 = vrot.slane %v38_v13, 2 }
  0x91   :  { %v40_v15 = vadd.f32 %v39_v14, %v38_v13 }
  0x93   :  { %v41_v16 = vrot.slane %v40_v15, 1 }
  0x95   :  { %v42_v18 = vadd.f32 %v41_v16, %v40_v15 }
  0x97   :  { %v45_v19 = vadd.f32 %v44_v17, %v42_v18 }
  0x99   :  { %47 = vst.msk [vmem:[#allocation3] sm:$0x1] %vm46_vm2, %v45_v19 }
  0x9a   :  { %76 = shalt.err (!%p73_p4)
}
  0x9b   :  { %s77_s26 = scalar_lea.hbm %s141_s3, 16 }
  0x9c   :  { %p78_p5 = scmp.ne.s32.totalorder %s141_s3, %s77_s26  ;;  %p81_p6 = scmp.lt.u32.totalorder %s77_s26, %s141_s3 }
  0x9e   :  { %p83_p7 = pnand %p81_p6, %p78_p5 }
  0xa0   :  { %86 = shalt.err (!%p83_p7)
}
  0xa1   :  { %57 = dma.vmem_to_hbm [thread:$0]  %s55_s22, 16, %s141_s3, [#allocation4]  }
  0xa2   :  { %87 = dma.done.wait [#allocation4], 16  }
  0xa3   :  { %88 = vsyncadd [#allocation4], 4294967280 }
  0xa4   :  { %61 = vsyncpa [#allocation4], 1 }

</bundles_post_ra>
